<compile_context>
chip_gen: v5e
topology: v5e:2x2
jax: 0.10.0
libtpu: 0.0.40
codegen_flags: <defaults>
</compile_context>

<pallas_src>
import jax
import jax.numpy as jnp
from jax.experimental import pallas as pl
from jax.experimental.pallas import tpu as pltpu

SUBLANE = 8          # f32 sublane quantum; batch rows live on sublanes
MAX_TB = 4096        # ~10-12 MiB/step VMEM (see budget above) -> safe on v5e/v6e/v7x


def _round_up(n, m):
    return ((n + m - 1) // m) * m


def _pick_tile(batch, max_tb=MAX_TB):
    """Padding-aware batch tile.  >=2 balanced steps for large batches (v7x's two
    TensorCores), a single step for small ones, capped at max_tb for VMEM safety."""
    if batch <= 1024:
        n_steps = 1
    else:
        n_steps = max(2, pl.cdiv(batch, max_tb))
        n_steps = _round_up(n_steps, 2)          # even step count -> balanced TC load
    return _round_up(pl.cdiv(batch, n_steps), SUBLANE)   # provably <= max_tb


def mlp_kernel(x_ref, w1t_ref, b1_ref, w2_ref, b2_ref, o_ref):
    # x_ref:   (tb, 4)  natural-layout input tile, batch on sublanes
    # w1t_ref: (4, 32)  linear1.weight transposed (resident across the grid)
    # b1_ref:  (1, 32)  linear1.bias row (resident)
    # w2_ref:  (1, 32)  linear2.weight row (resident)
    # b2_ref:  (1,)     linear2.bias scalar in SMEM
    # o_ref:   (tb, 1)  output tile
    h = jnp.dot(x_ref[...], w1t_ref[...],
                preferred_element_type=jnp.float32)        # (tb, 32)  MXU, K=4
    h = jnp.maximum(h + b1_ref[...], 0.0)                  # bias + ReLU on VPU
    # Layer 2: depth-32 -> width-1 contraction kept off the MXU:
    # VPU broadcast-multiply + XLU lane reduce.
    o = jnp.sum(h * w2_ref[...], axis=1, keepdims=True)    # (tb, 1)
    o_ref[...] = (o + b2_ref[0]).astype(o_ref.dtype)


def mlp_forward(x, w1, b1, w2, b2, *, max_block_b=MAX_TB):
    """x: (B, 4) f32.  Params in PyTorch layout: w1 (32,4), b1 (32,), w2 (1,32), b2 (1,)."""
    B = x.shape[0]
    tb = _pick_tile(B, max_block_b)
    n_blocks = pl.cdiv(B, tb)
    b_cover = n_blocks * tb                      # rows covered by the grid (>= B)

    # Tiny (<=512 B) param reshapes; no reformat pass over x itself.
    w1t = w1.T                                   # (4, 32)
    b1_row = b1.reshape(1, 32)
    w2_row = w2.reshape(1, 32)
    b2_s = b2.reshape(1)

    out = pl.pallas_call(
        mlp_kernel,
        out_shape=jax.ShapeDtypeStruct((b_cover, 1), jnp.float32),
        grid=(n_blocks,),
        in_specs=[
            pl.BlockSpec((tb, 4), lambda i: (i, 0)),            # x tile, batch on sublanes
            pl.BlockSpec((4, 32), lambda i: (0, 0)),            # W1^T resident
            pl.BlockSpec((1, 32), lambda i: (0, 0)),            # b1 resident
            pl.BlockSpec((1, 32), lambda i: (0, 0)),            # w2 resident
            pl.BlockSpec(memory_space=pltpu.MemorySpace.SMEM),  # b2 scalar
        ],
        out_specs=pl.BlockSpec((tb, 1), lambda i: (i, 0)),
        compiler_params=pltpu.CompilerParams(
            # Batch tiles are independent: lets v7x shard the grid across its 2 TCs.
            dimension_semantics=("parallel",),
            vmem_limit_bytes=32 * 1024 * 1024,
        ),
    )(x, w1t, b1_row, w2_row, b2_s)

    # Only slice when the grid over-covered the batch (tiny 4 B/row epilogue; a no-op
    # for batches that tile exactly, e.g. B = 8 or B = 2176).
    return out if b_cover == B else out[:B]


def init_params(key):
    """Deterministic init mimicking nn.Linear default U[-1/sqrt(fan_in), 1/sqrt(fan_in)].
    Weights kept in PyTorch [out, in] layout."""
    k1, k2, k3, k4 = jax.random.split(key, 4)
    bound1 = 1.0 / jnp.sqrt(4.0)
    bound2 = 1.0 / jnp.sqrt(32.0)
    w1 = jax.random.uniform(k1, (32, 4), jnp.float32, -bound1, bound1)
    b1 = jax.random.uniform(k2, (32,), jnp.float32, -bound1, bound1)
    w2 = jax.random.uniform(k3, (1, 32), jnp.float32, -bound2, bound2)
    b2 = jax.random.uniform(k4, (1,), jnp.float32, -bound2, bound2)
    return w1, b1, w2, b2


if __name__ == "__main__":
    key = jax.random.PRNGKey(0)
    kx, kp = jax.random.split(key)
    w1, b1, w2, b2 = init_params(kp)

    def ref_fn(x):
        return jnp.maximum(x @ w1.T + b1, 0.0) @ w2.T + b2

    # batch=8   : single exact tiny tile (no padding, no slice)
    # batch=250 : partial last tile (clamped DMA + discarded padded rows)
    # batch=2176: two exact 1088-row tiles -> balanced 2-step "parallel" grid
    for batch in (8, 250, 2176):
        x = jax.random.normal(kx, (batch, 4), jnp.float32)
        out = jax.block_until_ready(mlp_forward(x, w1, b1, w2, b2))
        assert out.shape == (batch, 1)
        assert jnp.allclose(out, ref_fn(x), atol=1e-4, rtol=1e-4)

    print("KERNEL_OK")
</pallas_src>

<mosaic_0001>
module attributes {stable_mosaic.version = 11 : i64} {
  func.func @mlp_kernel(%arg0: i32, %arg1: memref<8x4xf32, #tpu.memory_space<vmem>>, %arg2: memref<4x32xf32, #tpu.memory_space<vmem>>, %arg3: memref<1x32xf32, #tpu.memory_space<vmem>>, %arg4: memref<1x32xf32, #tpu.memory_space<vmem>>, %arg5: memref<1xf32, #tpu.memory_space<smem>>, %arg6: memref<8x1xf32, #tpu.memory_space<vmem>>) attributes {dimension_semantics = [#tpu.dimension_semantics<parallel>], iteration_bounds = array<i64: 1>, scalar_prefetch = 0 : i64, scratch_operands = 0 : i64, tpu.core_type = #tpu.core_type<tc>, window_params = [{transform_indices = @transform_0, window_bounds = array<i64: 8, 4>}, {pipeline_mode = #tpu.pipeline_mode<synchronous>, transform_indices = @transform_1, window_bounds = array<i64: 4, 32>}, {pipeline_mode = #tpu.pipeline_mode<synchronous>, transform_indices = @transform_2, window_bounds = array<i64: 1, 32>}, {pipeline_mode = #tpu.pipeline_mode<synchronous>, transform_indices = @transform_3, window_bounds = array<i64: 1, 32>}, {transform_indices = @transform_4, window_bounds = array<i64: 1>}, {transform_indices = @transform_5, window_bounds = array<i64: 8, 1>}]} {
    %c0 = arith.constant 0 : index
    %c0_0 = arith.constant 0 : index
    %0 = vector.load %arg1[%c0, %c0_0] : memref<8x4xf32, #tpu.memory_space<vmem>>, vector<8x4xf32>
    %c0_1 = arith.constant 0 : index
    %c0_2 = arith.constant 0 : index
    %1 = vector.load %arg2[%c0_1, %c0_2] : memref<4x32xf32, #tpu.memory_space<vmem>>, vector<4x32xf32>
    %cst = arith.constant dense<0.000000e+00> : vector<8x32xf32>
    %2 = tpu.matmul %0, %1, %cst {dimension_numbers = #tpu.dot_dimension_numbers<[1], [0], [0], [1], [0, 0, 1, 1], [], []>} : vector<8x4xf32>, vector<4x32xf32>, vector<8x32xf32> -> vector<8x32xf32>
    %c0_3 = arith.constant 0 : index
    %c0_4 = arith.constant 0 : index
    %3 = vector.load %arg3[%c0_3, %c0_4] : memref<1x32xf32, #tpu.memory_space<vmem>>, vector<1x32xf32>
    %4 = vector.broadcast %3 : vector<1x32xf32> to vector<8x32xf32>
    %5 = arith.addf %2, %4 : vector<8x32xf32>
    %cst_5 = arith.constant 0.000000e+00 : f32
    %6 = vector.broadcast %cst_5 : f32 to vector<8x32xf32>
    %7 = arith.maximumf %5, %6 : vector<8x32xf32>
    %c0_6 = arith.constant 0 : index
    %c0_7 = arith.constant 0 : index
    %8 = vector.load %arg4[%c0_6, %c0_7] : memref<1x32xf32, #tpu.memory_space<vmem>>, vector<1x32xf32>
    %9 = vector.broadcast %8 : vector<1x32xf32> to vector<8x32xf32>
    %10 = arith.mulf %7, %9 : vector<8x32xf32>
    %cst_8 = arith.constant dense<0.000000e+00> : vector<8xf32>
    %11 = vector.multi_reduction <add>, %10, %cst_8 [1] : vector<8x32xf32> to vector<8xf32>
    %12 = vector.shape_cast %11 : vector<8xf32> to vector<8x1xf32>
    %c0_9 = arith.constant 0 : index
    %13 = memref.load %arg5[%c0_9] : memref<1xf32, #tpu.memory_space<smem>>
    %14 = vector.broadcast %13 : f32 to vector<8x1xf32>
    %15 = arith.addf %12, %14 : vector<8x1xf32>
    %c0_10 = arith.constant 0 : index
    %c0_11 = arith.constant 0 : index
    %16 = vector.load %arg6[%c0_10, %c0_11] : memref<8x1xf32, #tpu.memory_space<vmem>>, vector<8x1xf32>
    tpu.vector_store %arg6[%c0_10, %c0_11], %15 {strides = array<i32>} : memref<8x1xf32, #tpu.memory_space<vmem>>, vector<8x1xf32>,
    return
  }
  func.func @transform_0(%arg0: i32) -> (i32, i32) {
    %c0_i32 = arith.constant 0 : i32
    %c0_i32_0 = arith.constant 0 : i32
    return %arg0, %c0_i32 : i32, i32
  }
  func.func @transform_1(%arg0: i32) -> (i32, i32) {
    %c0_i32 = arith.constant 0 : i32
    %c0_i32_0 = arith.constant 0 : i32
    %c0_i32_1 = arith.constant 0 : i32
    return %c0_i32, %c0_i32_0 : i32, i32
  }
  func.func @transform_2(%arg0: i32) -> (i32, i32) {
    %c0_i32 = arith.constant 0 : i32
    %c0_i32_0 = arith.constant 0 : i32
    %c0_i32_1 = arith.constant 0 : i32
    return %c0_i32, %c0_i32_0 : i32, i32
  }
  func.func @transform_3(%arg0: i32) -> (i32, i32) {
    %c0_i32 = arith.constant 0 : i32
    %c0_i32_0 = arith.constant 0 : i32
    %c0_i32_1 = arith.constant 0 : i32
    return %c0_i32, %c0_i32_0 : i32, i32
  }
  func.func @transform_4(%arg0: i32) -> i32 {
    %c0_i32 = arith.constant 0 : i32
    %c0_i32_0 = arith.constant 0 : i32
    return %c0_i32 : i32
  }
  func.func @transform_5(%arg0: i32) -> (i32, i32) {
    %c0_i32 = arith.constant 0 : i32
    %c0_i32_0 = arith.constant 0 : i32
    return %arg0, %c0_i32 : i32, i32
  }
}

</mosaic_0001>

<bundles_post_ra>
// kernel: tpu_custom_call.1
= control target key start
LH: loop header
LB: loop body
LE: loop exit
PB: predicated region body
PF: predicated region fallthrough
CT: control target
= control target key end

     0   :  { %vm31_vm0 = vcmask 1043456   ;;  %vm27_vm1 = vcmask 31744   ;;  %vm61_vm2 = vcmask 261120   ;;  %vm68_vm3 = vcmask 7168   ;;  %s126_s1 = inlined_call_operand.vmem [shape: f32[4,32], index: 1, kind: input, shape index: {}]   ;;  %s127_s0 = inlined_call_operand.vmem [shape: f32[8,4], index: 0, kind: input, shape index: {}]   ;;  %s128_s2 = inlined_call_operand.vmem [shape: f32[1,32], index: 2, kind: input, shape index: {}]   ;;  %s129_s3 = inlined_call_operand.vmem [shape: f32[1,32], index: 3, kind: input, shape index: {}]   ;;  %s130_s4 = inlined_call_operand.<no memory space> [shape: f32[1], index: 4, kind: input, shape index: {}]   ;;  %s131_s5 = inlined_call_operand.vmem [shape: f32[8,1], index: 5, kind: output, shape index: {}]  }
   0x1   :  { %v22_v0 = vld [vmem:[%s126_s1] sm:$0xf]  ;;  %v66_v9 = vstv %s130_s4 }
   0x2   :  { %v21_v1 = vld [vmem:[%s127_s0] sm:$0xff]  ;;  %74 = vmatpush.msk.msra.mxu0 %vm31_vm0, %v22_v0 }
   0x3   :  { %75 = vmatmul.msk.f32.vlgmr.msra.gmra.mxu0 %vm27_vm1, %v21_v1  ;;  %v76_v2 = vld [vmem:[%s128_s2] ss:$0 sm:$0xff] }
   0x4   :  { %v77_v5 = vld [vmem:[%s129_s3] ss:$0 sm:$0xff] }
  0x80   :  { %v52_v3 = vpop.f32.mrf.mxu0 }
  0x81   :  { %v53_v4 = vadd.f32 %v76_v2, %v52_v3 }
  0x83   :  { %v55_v6 = vmax.f32 %v53_v4, 0.0 }
  0x85   :  { %v60_v7 = vmul.f32 %v77_v5, %v55_v6 }
  0x87   :  { %v62_v8 = vsel %vm61_vm2, %v60_v7, 0.0 }
  0x88   :  { %63 = vadd.xlane.f32.xlu0 %v62_v8 }
  0xfb   :  { %v64_v10 = vpop.xlane.xlu0 %63 }
  0xfc   :  { %v67_v11 = vadd.f32 %v66_v9, %v64_v10 }
  0xfe   :  { %69 = vst.msk [vmem:[%s131_s5] sm:$0xff] %vm68_vm3, %v67_v11 }

</bundles_post_ra>
